<compile_context>
chip_gen: v6e
topology: v6e:2x2x1
jax: 0.10.0
libtpu: 0.0.40
codegen_flags: <defaults>
</compile_context>

<pallas_src>
import functools

import numpy as np
import jax
import jax.numpy as jnp
from jax import lax
from jax.experimental import pallas as pl
from jax.experimental.pallas import tpu as pltpu


def _l2pool_taps(filter_size: int) -> np.ndarray:
    """Separable 1-D taps: hanning(fs)[1:-1], normalized so outer(a,a) == 2-D filter."""
    a = np.hanning(filter_size)[1:-1].astype(np.float64)
    a = a / a.sum()
    return a.astype(np.float32)


def _pick_lane_chunk(b: int, bytes_per_lane: int, target_bytes: int = 2 << 20) -> int:
    """Chunk of the lane (N*C) fold: multiple of 128 dividing b (or full b), ~2 MiB block."""
    if b % 128 != 0:
        return b                      # full-extent lane dim is always legal
    max_lanes = max(1, target_bytes // max(bytes_per_lane, 1))
    tb = min(b, max(128, (max_lanes // 128) * 128))
    while b % tb:
        tb -= 128
    return tb


def _l2pool_kernel(x_ref, o_ref, *, taps, pad, h, w, out_h, out_w):
    # x_ref: (H, W, TB)  -- TB planes of the N*C fold on lanes
    # o_ref: (out_h, out_w, TB)
    k = len(taps)
    tb = x_ref.shape[-1]

    x = x_ref[...].astype(jnp.float32)
    x2 = x * x                                            # square; pad zeros stay zero

    # --- row pass (along W, the sublane dim): zero-pad W in VMEM, k-tap weighted sum.
    if pad > 0:
        zw = jnp.zeros((h, pad, tb), jnp.float32)
        xp = jnp.concatenate([zw, x2, zw], axis=1)        # (h, w + 2*pad, tb)
    else:
        xp = x2
    t = taps[0] * xp[:, 0:out_w, :]
    for dj in range(1, k):
        t = t + taps[dj] * xp[:, dj:dj + out_w, :]

    # --- column pass (along H, a leading dim -> pure address offsets).
    if pad > 0:
        zh = jnp.zeros((pad, out_w, tb), jnp.float32)
        tp = jnp.concatenate([zh, t, zh], axis=0)         # (h + 2*pad, out_w, tb)
    else:
        tp = t
    acc = taps[0] * tp[0:out_h]
    for di in range(1, k):
        acc = acc + taps[di] * tp[di:di + out_h]

    o_ref[...] = jnp.sqrt(acc + 1e-12).astype(o_ref.dtype)


def l2pooling(x, filter_size=5, stride=1):
    """Pallas L2pooling forward. x: (N, C, H, W) float array -> (N, C, out_h, out_w)."""
    n, c, h, w = x.shape
    b = n * c
    taps = tuple(float(v) for v in _l2pool_taps(filter_size))
    k = len(taps)
    pad = (filter_size - 2) // 2
    out_h = h + 2 * pad - k + 1
    out_w = w + 2 * pad - k + 1

    # Lane-dense layout: put the (N*C) fold on lanes.  Pure layout plumbing (no pad pass).
    xt = jnp.transpose(x.reshape(b, h, w), (1, 2, 0))     # (H, W, B)

    bytes_per_lane = max(h * w, out_h * out_w) * 4
    tb = _pick_lane_chunk(b, bytes_per_lane)
    grid = (b // tb,)

    kernel = functools.partial(_l2pool_kernel, taps=taps, pad=pad,
                               h=h, w=w, out_h=out_h, out_w=out_w)
    yt = pl.pallas_call(
        kernel,
        out_shape=jax.ShapeDtypeStruct((out_h, out_w, b), x.dtype),
        grid=grid,
        in_specs=[pl.BlockSpec((h, w, tb), lambda i: (0, 0, i))],
        out_specs=pl.BlockSpec((out_h, out_w, tb), lambda i: (0, 0, i)),
        compiler_params=pltpu.CompilerParams(
            dimension_semantics=("parallel",),
            vmem_limit_bytes=32 * 1024 * 1024,
        ),
    )(xt)

    if stride != 1:
        # Matches F.conv2d's strided output exactly (subsample of the stride-1 grid).
        # TODO(synk): fold the stride subsample into the kernel's column pass to avoid
        # writing the full-resolution output for stride > 1.
        yt = yt[::stride, ::stride, :]

    oh, ow = yt.shape[0], yt.shape[1]
    return jnp.transpose(yt, (2, 0, 1)).reshape(n, c, oh, ow)


def l2pooling_ref(x, filter_size=5, stride=1):
    """Pure-JAX reference mirroring the PyTorch module (for validation)."""
    n, c, h, w = x.shape
    a = np.hanning(filter_size)[1:-1]
    g = a[:, None] * a[None, :]
    g = (g / g.sum()).astype(np.float32)
    filt = jnp.tile(jnp.asarray(g)[None, None], (c, 1, 1, 1))   # (C, 1, k, k)
    pad = (filter_size - 2) // 2
    out = lax.conv_general_dilated(
        x.astype(jnp.float32) ** 2,
        filt,
        window_strides=(stride, stride),
        padding=[(pad, pad), (pad, pad)],
        dimension_numbers=("NCHW", "OIHW", "NCHW"),
        feature_group_count=c,
    )
    return jnp.sqrt(out + 1e-12).astype(x.dtype)


if __name__ == "__main__":
    key = jax.random.PRNGKey(0)
    x = jax.random.normal(key, (2, 4, 16, 16), dtype=jnp.float32)

    # stride=1 (module default)
    y1 = jax.block_until_ready(l2pooling(x, filter_size=5, stride=1))
    r1 = jax.block_until_ready(l2pooling_ref(x, filter_size=5, stride=1))
    assert y1.shape == r1.shape == (2, 4, 16, 16)
    np.testing.assert_allclose(np.asarray(y1), np.asarray(r1), rtol=1e-5, atol=1e-5)

    # stride=2 (the configuration TReS actually instantiates)
    y2 = jax.block_until_ready(l2pooling(x, filter_size=5, stride=2))
    r2 = jax.block_until_ready(l2pooling_ref(x, filter_size=5, stride=2))
    assert y2.shape == r2.shape == (2, 4, 8, 8)
    np.testing.assert_allclose(np.asarray(y2), np.asarray(r2), rtol=1e-5, atol=1e-5)

    print("KERNEL_OK")
</pallas_src>

<mosaic_0001>
module attributes {stable_mosaic.version = 11 : i64} {
  func.func @_l2pool_kernel(%arg0: i32, %arg1: memref<16x16x8xf32, #tpu.memory_space<vmem>>, %arg2: memref<16x16x8xf32, #tpu.memory_space<vmem>>) attributes {dimension_semantics = [#tpu.dimension_semantics<parallel>], iteration_bounds = array<i64: 1>, scalar_prefetch = 0 : i64, scratch_operands = 0 : i64, tpu.core_type = #tpu.core_type<tc>, window_params = [{transform_indices = @transform_0, window_bounds = array<i64: 16, 16, 8>}, {transform_indices = @transform_1, window_bounds = array<i64: 16, 16, 8>}]} {
    %c0 = arith.constant 0 : index
    %c0_0 = arith.constant 0 : index
    %c0_1 = arith.constant 0 : index
    %0 = vector.load %arg1[%c0, %c0_0, %c0_1] : memref<16x16x8xf32, #tpu.memory_space<vmem>>, vector<16x16x8xf32>
    %1 = arith.mulf %0, %0 : vector<16x16x8xf32>
    %cst = arith.constant 0.000000e+00 : f32
    %2 = vector.broadcast %cst : f32 to vector<16x1x8xf32>
    %3 = tpu.concatenate %2, %1, %2 in 1 : vector<16x1x8xf32>, vector<16x16x8xf32>, vector<16x1x8xf32> -> vector<16x18x8xf32>
    %4 = vector.extract_strided_slice %3 {offsets = [0, 0, 0], sizes = [16, 16, 8], strides = [1, 1, 1]} : vector<16x18x8xf32> to vector<16x16x8xf32>
    %cst_2 = arith.constant 2.500000e-01 : f32
    %5 = vector.broadcast %cst_2 : f32 to vector<16x16x8xf32>
    %6 = arith.mulf %5, %4 : vector<16x16x8xf32>
    %7 = vector.extract_strided_slice %3 {offsets = [0, 1, 0], sizes = [16, 16, 8], strides = [1, 1, 1]} : vector<16x18x8xf32> to vector<16x16x8xf32>
    %cst_3 = arith.constant 5.000000e-01 : f32
    %8 = vector.broadcast %cst_3 : f32 to vector<16x16x8xf32>
    %9 = arith.mulf %8, %7 : vector<16x16x8xf32>
    %10 = arith.addf %6, %9 : vector<16x16x8xf32>
    %11 = vector.extract_strided_slice %3 {offsets = [0, 2, 0], sizes = [16, 16, 8], strides = [1, 1, 1]} : vector<16x18x8xf32> to vector<16x16x8xf32>
    %cst_4 = arith.constant 2.500000e-01 : f32
    %12 = vector.broadcast %cst_4 : f32 to vector<16x16x8xf32>
    %13 = arith.mulf %12, %11 : vector<16x16x8xf32>
    %14 = arith.addf %10, %13 : vector<16x16x8xf32>
    %cst_5 = arith.constant 0.000000e+00 : f32
    %15 = vector.broadcast %cst_5 : f32 to vector<1x16x8xf32>
    %16 = tpu.concatenate %15, %14, %15 in 0 : vector<1x16x8xf32>, vector<16x16x8xf32>, vector<1x16x8xf32> -> vector<18x16x8xf32>
    %17 = vector.extract_strided_slice %16 {offsets = [0, 0, 0], sizes = [16, 16, 8], strides = [1, 1, 1]} : vector<18x16x8xf32> to vector<16x16x8xf32>
    %cst_6 = arith.constant 2.500000e-01 : f32
    %18 = vector.broadcast %cst_6 : f32 to vector<16x16x8xf32>
    %19 = arith.mulf %18, %17 : vector<16x16x8xf32>
    %20 = vector.extract_strided_slice %16 {offsets = [1, 0, 0], sizes = [16, 16, 8], strides = [1, 1, 1]} : vector<18x16x8xf32> to vector<16x16x8xf32>
    %cst_7 = arith.constant 5.000000e-01 : f32
    %21 = vector.broadcast %cst_7 : f32 to vector<16x16x8xf32>
    %22 = arith.mulf %21, %20 : vector<16x16x8xf32>
    %23 = arith.addf %19, %22 : vector<16x16x8xf32>
    %24 = vector.extract_strided_slice %16 {offsets = [2, 0, 0], sizes = [16, 16, 8], strides = [1, 1, 1]} : vector<18x16x8xf32> to vector<16x16x8xf32>
    %cst_8 = arith.constant 2.500000e-01 : f32
    %25 = vector.broadcast %cst_8 : f32 to vector<16x16x8xf32>
    %26 = arith.mulf %25, %24 : vector<16x16x8xf32>
    %27 = arith.addf %23, %26 : vector<16x16x8xf32>
    %cst_9 = arith.constant 9.99999996E-13 : f32
    %28 = vector.broadcast %cst_9 : f32 to vector<16x16x8xf32>
    %29 = arith.addf %27, %28 : vector<16x16x8xf32>
    %30 = math.sqrt %29 : vector<16x16x8xf32>
    %c0_10 = arith.constant 0 : index
    %c0_11 = arith.constant 0 : index
    %c0_12 = arith.constant 0 : index
    %31 = vector.load %arg2[%c0_10, %c0_11, %c0_12] : memref<16x16x8xf32, #tpu.memory_space<vmem>>, vector<16x16x8xf32>
    tpu.vector_store %arg2[%c0_10, %c0_11, %c0_12], %30 {strides = array<i32>} : memref<16x16x8xf32, #tpu.memory_space<vmem>>, vector<16x16x8xf32>,
    return
  }
  func.func @transform_0(%arg0: i32) -> (i32, i32, i32) {
    %c0_i32 = arith.constant 0 : i32
    %c0_i32_0 = arith.constant 0 : i32
    %c0_i32_1 = arith.constant 0 : i32
    return %c0_i32, %c0_i32_0, %arg0 : i32, i32, i32
  }
  func.func @transform_1(%arg0: i32) -> (i32, i32, i32) {
    %c0_i32 = arith.constant 0 : i32
    %c0_i32_0 = arith.constant 0 : i32
    %c0_i32_1 = arith.constant 0 : i32
    return %c0_i32, %c0_i32_0, %arg0 : i32, i32, i32
  }
}

</mosaic_0001>

<bundles_post_ra>
// kernel: tpu_custom_call.1
= control target key start
LH: loop header
LB: loop body
LE: loop exit
PB: predicated region body
PF: predicated region fallthrough
CT: control target
= control target key end

     0   :  { %vm104_vm0 = vcmask 1040384   ;;  %vm361_vm1 = vcmask 1046528   ;;  %vm570_vm2 = vcmask 1045504   ;;  %vm1099_vm5 = vcmask 64512   ;;  %s1991_s0 = inlined_call_operand.vmem [shape: f32[16,16,8], index: 0, kind: input, shape index: {}]   ;;  %s1992_s1 = inlined_call_operand.vmem [shape: f32[16,16,8], index: 1, kind: output, shape index: {}]  }
   0x1   :  { %v8_v0 = vld [vmem:[%s1991_s0] sm:$0xff]  ;;  %v9_v1 = vld [vmem:[%s1991_s0 + $0x8] sm:$0xff]  ;;  %v10_v2 = vld [vmem:[%s1991_s0 + $0x10] sm:$0xff] }
   0x2   :  { %v11_v3 = vld [vmem:[%s1991_s0 + $0x18] sm:$0xff]  ;;  %v40_v4 = vmul.f32 %v8_v0, %v8_v0  ;;  %v41_v5 = vmul.f32 %v9_v1, %v9_v1  ;;  %v42_v6 = vmul.f32 %v10_v2, %v10_v2  ;;  %v12_v7 = vld [vmem:[%s1991_s0 + $0x20] sm:$0xff]  ;;  %v13_v8 = vld [vmem:[%s1991_s0 + $0x28] sm:$0xff] }
   0x3   :  { %v43_v9 = vmul.f32 %v11_v3, %v11_v3  ;;  %v44_v10 = vmul.f32 %v12_v7, %v12_v7  ;;  %v1228_v11 = vmul.f32 %v13_v8, %v13_v8 }
   0x4   :  { %v105_v12 = vrot.slane %v40_v4, 7  ;;  %v106_v13 = vrot.slane %v41_v5, 7  ;;  %v108_v14 = vrot.slane %v42_v6, 7  ;;  %v14_v6 = vld [vmem:[%s1991_s0 + $0x30] sm:$0xff] }
   0x5   :  { %v109_v15 = vrot.slane %v43_v9, 7  ;;  %v111_v16 = vrot.slane %v44_v10, 7  ;;  %v112_v17 = vrot.slane %v1228_v11, 7  ;;  %v15_v10 = vld [vmem:[%s1991_s0 + $0x38] sm:$0xff] }
   0x6   :  { %v107_v18 = vsel %vm104_vm0, %v105_v12, %v106_v13  ;;  %v201_v19 = vsel %vm104_vm0, 0.0, %v105_v12  ;;  %v202_v20 = vsel %vm104_vm0, 0.0, %v108_v14  ;;  %v217_v21 = vsel %vm104_vm0, %v106_v13, 0.0 }
   0x7   :  { %v110_v22 = vsel %vm104_vm0, %v108_v14, %v109_v15  ;;  %v233_v23 = vmul.f32 0.25, %v201_v19  ;;  %v234_v24 = vmul.f32 0.25, %v107_v18  ;;  %v235_v25 = vmul.f32 0.25, %v202_v20 }
   0x8   :  { %v236_v26 = vmul.f32 0.25, %v110_v22  ;;  %v265_v27 = vmul.f32 0.5, %v201_v19  ;;  %v266_v28 = vmul.f32 0.5, %v107_v18  ;;  %v268_v29 = vmul.f32 0.5, %v202_v20 }
   0x9   :  { %v269_v30 = vmul.f32 0.5, %v110_v22  ;;  %v571_v31 = vrot.slane %v233_v23, 2  ;;  %v572_v32 = vrot.slane %v234_v24, 2  ;;  %v576_v33 = vrot.slane %v235_v25, 2 }
   0xa   :  { %v362_v34 = vrot.slane %v265_v27, 1  ;;  %v363_v35 = vrot.slane %v266_v28, 1  ;;  %v367_v36 = vrot.slane %v268_v29, 1  ;;  %v577_v37 = vrot.slane %v236_v26, 2 }
   0xb   :  { %v368_v38 = vrot.slane %v269_v30, 1  ;;  %v573_v39 = vsel %vm570_vm2, %v571_v31, %v572_v32  ;;  %v218_v40 = vsel %vm104_vm0, %v109_v15, 0.0  ;;  %v267_v41 = vmul.f32 0.5, %v217_v21 }
   0xc   :  { %v364_v42 = vsel %vm361_vm1, %v362_v34, %v363_v35  ;;  %v578_v43 = vsel %vm570_vm2, %v576_v33, %v577_v37  ;;  %v270_v44 = vmul.f32 0.5, %v218_v40  ;;  %v506_v45 = vmul.f32 0.25, %v217_v21 }
   0xd   :  { %v369_v46 = vsel %vm361_vm1, %v367_v36, %v368_v38  ;;  %v474_v47 = vadd.f32 %v364_v42, %v233_v23  ;;  %v365_v48 = vrot.slane %v267_v41, 1  ;;  %v507_v49 = vmul.f32 0.25, %v218_v40 }
   0xe   :  { %v476_v50 = vadd.f32 %v369_v46, %v235_v25  ;;  %v370_v51 = vrot.slane %v270_v44, 1  ;;  %v574_v52 = vrot.slane %v506_v45, 2  ;;  %v113_v53 = vsel %vm104_vm0, %v111_v16, %v112_v17 }
   0xf   :  { %v683_v54 = vadd.f32 %v573_v39, %v474_v47  ;;  %v366_v55 = vsel %vm361_vm1, %v363_v35, %v365_v48  ;;  %v579_v56 = vrot.slane %v507_v49, 2  ;;  %v203_v57 = vsel %vm104_vm0, 0.0, %v111_v16  ;;  %v16_v48 = vld [vmem:[%s1991_s0 + $0x40] sm:$0xff] }
  0x10   :  { %v685_v58 = vadd.f32 %v578_v43, %v476_v50  ;;  %v371_v59 = vsel %vm361_vm1, %v368_v38, %v370_v51  ;;  %v475_v60 = vadd.f32 %v366_v55, %v234_v24  ;;  %v575_v61 = vsel %vm570_vm2, %v572_v32, %v574_v52 }
  0x11   :  { %v745_v62 = vmul.f32 0.5, %v683_v54  ;;  %v477_v63 = vadd.f32 %v371_v59, %v236_v26  ;;  %v580_v0 = vsel %vm570_vm2, %v577_v37, %v579_v56  ;;  %v237_v1 = vmul.f32 0.25, %v203_v57 }
  0x12   :  { %v1249_v2 = vmul.f32 0.25, %v685_v58  ;;  %v684_v3 = vadd.f32 %v575_v61, %v475_v60  ;;  %v238_v4 = vmul.f32 0.25, %v113_v53  ;;  %v271_v5 = vmul.f32 0.5, %v203_v57  ;;  %v17_v57 = vld [vmem:[%s1991_s0 + $0x48] sm:$0xff] }
  0x13   :  { %v686_v7 = vadd.f32 %v580_v0, %v477_v63  ;;  %v272_v8 = vmul.f32 0.5, %v113_v53  ;;  %v581_v9 = vrot.slane %v237_v1, 2  ;;  %v219_v19 = vsel %vm104_vm0, %v112_v17, 0.0 }
  0x14   :  { %v811_v12 = vadd.f32 %v745_v62, %v1249_v2  ;;  %v746_v13 = vmul.f32 0.5, %v684_v3  ;;  %v372_v14 = vrot.slane %v271_v5, 1  ;;  %v582_v15 = vrot.slane %v238_v4, 2 }
  0x15   :  { %v1258_v16 = vmul.f32 0.25, %v686_v7  ;;  %v373_v18 = vrot.slane %v272_v8, 1  ;;  %v46_v20 = vmul.f32 %v14_v6, %v14_v6  ;;  %v273_v22 = vmul.f32 0.5, %v219_v19 }
  0x16   :  { %v1263_v21 = vadd.f32 1e-12, %v811_v12  ;;  %v508_v23 = vmul.f32 0.25, %v219_v19  ;;  %v47_v24 = vmul.f32 %v15_v10, %v15_v10  ;;  %v583_v27 = vsel %vm570_vm2, %v581_v9, %v582_v15 }
  0x17   :  { %v812_v25 = vadd.f32 %v746_v13, %v1258_v16  ;;  %v374_v26 = vsel %vm361_vm1, %v372_v14, %v373_v18  ;;  %v715_v28 = vmul.f32 0.25, %v683_v54  ;;  %v747_v29 = vmul.f32 0.5, %v685_v58 }
  0x18   :  { %1136 = vrsqrt.f32 %v1263_v21  ;;  %v478_v11 = vadd.f32 %v374_v26, %v237_v1  ;;  %v375_v17 = vrot.slane %v273_v22, 1  ;;  %v584_v31 = vrot.slane %v508_v23, 2 }
  0x19   :  { %v1269_v30 = vadd.f32 1e-12, %v812_v25  ;;  %v114_v32 = vrot.slane %v46_v20, 7  ;;  %v115_v33 = vrot.slane %v47_v24, 7  ;;  %v716_v34 = vmul.f32 0.25, %v684_v3 }
  0x1a   :  { %v748_v35 = vmul.f32 0.5, %v686_v7  ;;  %v687_v36 = vadd.f32 %v583_v27, %v478_v11  ;;  %v779_v37 = vadd.f32 %v747_v29, %v715_v28  ;;  %v376_v38 = vsel %vm361_vm1, %v373_v18, %v375_v17 }
  0x1b   :  { %1138 = vrsqrt.f32 %v1269_v30  ;;  %v585_v39 = vsel %vm570_vm2, %v582_v15, %v584_v31  ;;  %vm877_vm3 = vcmp.eq.f32.partialorder %v1263_v21, inf  ;;  %v479_v40 = vadd.f32 %v376_v38, %v238_v4 }
  0x1c   :  { %v116_v41 = vsel %vm104_vm0, %v114_v32, %v115_v33  ;;  %v204_v42 = vsel %vm104_vm0, 0.0, %v114_v32  ;;  %v220_v43 = vsel %vm104_vm0, %v115_v33, 0.0  ;;  %vm879_vm4 = vcmp.eq.f32.partialorder %v1263_v21, 0.0 }
  0x1d   :  { %v1279_v44 = vmul.f32 0.25, %v687_v36  ;;  %v239_v45 = vmul.f32 0.25, %v204_v42  ;;  %v240_v46 = vmul.f32 0.25, %v116_v41  ;;  %v274_v47 = vmul.f32 0.5, %v204_v42 }
  0x1e   :  { %v688_v49 = vadd.f32 %v585_v39, %v479_v40  ;;  %v780_v50 = vadd.f32 %v748_v35, %v716_v34  ;;  %v275_v51 = vmul.f32 0.5, %v116_v41  ;;  %v276_v52 = vmul.f32 0.5, %v220_v43  ;;  %v18_v39 = vld [vmem:[%s1991_s0 + $0x50] sm:$0xff] }
  0x1f   :  { %v813_v53 = vadd.f32 %v779_v37, %v1279_v44  ;;  %v377_v54 = vrot.slane %v274_v47, 1  ;;  %v586_v55 = vrot.slane %v239_v45, 2  ;;  %v587_v56 = vrot.slane %v240_v46, 2 }
  0x20   :  { %v1288_v58 = vmul.f32 0.25, %v688_v49  ;;  %v378_v59 = vrot.slane %v275_v51, 1  ;;  %v380_v60 = vrot.slane %v276_v52, 1  ;;  %v48_v61 = vmul.f32 %v16_v48, %v16_v48  ;;  %v19_v52 = vld [vmem:[%s1991_s0 + $0x58] sm:$0xff] }
  0x21   :  { %v1290_v62 = vadd.f32 1e-12, %v813_v53  ;;  %v749_v63 = vmul.f32 0.5, %v687_v36  ;;  %v509_v0 = vmul.f32 0.25, %v220_v43  ;;  %v750_v1 = vmul.f32 0.5, %v688_v49 }
  0x22   :  { %v814_v3 = vadd.f32 %v780_v50, %v1288_v58  ;;  %v379_v4 = vsel %vm361_vm1, %v377_v54, %v378_v59  ;;  %v381_v5 = vsel %vm361_vm1, %v378_v59, %v380_v60  ;;  %v49_v6 = vmul.f32 %v17_v57, %v17_v57 }
  0x23   :  { %v880_v7 = vand.u32 2147483648, %v1263_v21  ;;  %vm884_vm6 = vcmp.eq.f32.partialorder %v1269_v30, inf  ;;  %1140 = vrsqrt.f32 %v1290_v62  ;;  %v588_v8 = vsel %vm570_vm2, %v586_v55, %v587_v56 }
  0x24   :  { %v1299_v10 = vadd.f32 1e-12, %v814_v3  ;;  %v480_v12 = vadd.f32 %v379_v4, %v239_v45  ;;  %v481_v13 = vadd.f32 %v381_v5, %v240_v46  ;;  %v589_v14 = vrot.slane %v509_v0, 2 }
  0x25   :  { %v1137_v9 = vpop.eup %1136  ;;  %vm886_vm7 = vcmp.eq.f32.partialorder %v1269_v30, 0.0  ;;  %v117_v18 = vrot.slane %v48_v61, 7  ;;  %v118_v19 = vrot.slane %v49_v6, 7  ;;  %v887_v20 = vand.u32 2147483648, %v1269_v30 }
  0x26   :  { %v876_v15 = vmul.f32 %v1137_v9, %v1263_v21  ;;  %1142 = vrsqrt.f32 %v1299_v10  ;;  %v781_v22 = vadd.f32 %v749_v63, %v1249_v2  ;;  %v782_v23 = vadd.f32 %v750_v1, %v1258_v16 }
  0x27   :  { %v689_v26 = vadd.f32 %v588_v8, %v480_v12  ;;  %v590_v27 = vsel %vm570_vm2, %v587_v56, %v589_v14  ;;  %v119_v28 = vsel %vm104_vm0, %v117_v18, %v118_v19  ;;  %v205_v2 = vsel %vm104_vm0, 0.0, %v117_v18 }
  0x28   :  { %v1139_v24 = vpop.eup %1138  ;;  %v878_v25 = vsel %vm877_vm3, %v1263_v21, %v876_v15  ;;  %v690_v17 = vadd.f32 %v590_v27, %v481_v13  ;;  %v241_v31 = vmul.f32 0.25, %v205_v2  ;;  %v242_v32 = vmul.f32 0.25, %v119_v28 }
  0x29   :  { %v881_v29 = vsel %vm879_vm4, %v880_v7, %v878_v25  ;;  %v883_v11 = vmul.f32 %v1139_v24, %v1269_v30  ;;  %v1320_v16 = vmul.f32 0.25, %v689_v26  ;;  %v277_v33 = vmul.f32 0.5, %v205_v2 }
  0x2a   :  { %1100 = vst.msk [vmem:[%s1992_s1] sm:$0xff] %vm1099_vm5, %v881_v29  ;;  %v1325_v34 = vmul.f32 0.25, %v690_v17  ;;  %v278_v35 = vmul.f32 0.5, %v119_v28  ;;  %v591_v42 = vrot.slane %v241_v31, 2  ;;  %v592_v43 = vrot.slane %v242_v32, 2 }
  0x2b   :  { %v885_v21 = vsel %vm884_vm6, %v1269_v30, %v883_v11  ;;  %v815_v37 = vadd.f32 %v781_v22, %v1320_v16  ;;  %v382_v38 = vrot.slane %v277_v33, 1  ;;  %vm891_vm8 = vcmp.eq.f32.partialorder %v1290_v62, inf }
  0x2c   :  { %v888_v36 = vsel %vm886_vm7, %v887_v20, %v885_v21  ;;  %v816_v40 = vadd.f32 %v782_v23, %v1325_v34  ;;  %v383_v41 = vrot.slane %v278_v35, 1  ;;  %v751_v45 = vmul.f32 0.5, %v689_v26 }
  0x2d   :  { %1101 = vst.msk [vmem:[%s1992_s1 + $0x8] sm:$0xff] %vm1099_vm5, %v888_v36  ;;  %v1339_v30 = vadd.f32 1e-12, %v815_v37  ;;  %v221_v46 = vsel %vm104_vm0, %v118_v19, 0.0  ;;  %v50_v50 = vmul.f32 %v18_v39, %v18_v39  ;;  %vm893_vm9 = vcmp.eq.f32.partialorder %v1290_v62, 0.0  ;;  %v20_v36 = vld [vmem:[%s1991_s0 + $0x60] sm:$0xff] }
  0x2e   :  { %v1342_v47 = vadd.f32 1e-12, %v816_v40  ;;  %v384_v48 = vsel %vm361_vm1, %v382_v38, %v383_v41  ;;  %v279_v49 = vmul.f32 0.5, %v221_v46  ;;  %v894_v51 = vand.u32 2147483648, %v1290_v62 }
  0x2f   :  { %vm898_vm10 = vcmp.eq.f32.partialorder %v1299_v10, inf  ;;  %1144 = vrsqrt.f32 %v1339_v30  ;;  %vm900_vm11 = vcmp.eq.f32.partialorder %v1299_v10, 0.0  ;;  %v593_v54 = vsel %vm570_vm2, %v591_v42, %v592_v43 }
  0x30   :  { %v1141_v53 = vpop.eup %1140  ;;  %1146 = vrsqrt.f32 %v1342_v47  ;;  %v752_v55 = vmul.f32 0.5, %v690_v17  ;;  %v482_v57 = vadd.f32 %v384_v48, %v241_v31  ;;  %v385_v59 = vrot.slane %v279_v49, 1 }
  0x31   :  { %v890_v56 = vmul.f32 %v1141_v53, %v1290_v62  ;;  %v510_v60 = vmul.f32 0.25, %v221_v46  ;;  %v901_v61 = vand.u32 2147483648, %v1299_v10  ;;  %v783_v63 = vadd.f32 %v751_v45, %v1279_v44 }
  0x32   :  { %v51_v0 = vmul.f32 %v19_v52, %v19_v52  ;;  %v120_v1 = vrot.slane %v50_v50, 7  ;;  %v691_v5 = vadd.f32 %v593_v54, %v482_v57  ;;  %v386_v6 = vsel %vm361_vm1, %v383_v41, %v385_v59 }
  0x33   :  { %v1143_v3 = vpop.eup %1142  ;;  %v892_v4 = vsel %vm891_vm8, %v1290_v62, %v890_v56  ;;  %v594_v7 = vrot.slane %v510_v60, 2  ;;  %vm905_vm12 = vcmp.eq.f32.partialorder %v1339_v30, inf  ;;  %v483_v12 = vadd.f32 %v386_v6, %v242_v32 }
  0x34   :  { %v895_v8 = vsel %vm893_vm9, %v894_v51, %v892_v4  ;;  %v897_v9 = vmul.f32 %v1143_v3, %v1299_v10  ;;  %v121_v44 = vrot.slane %v51_v0, 7  ;;  %vm907_vm13 = vcmp.eq.f32.partialorder %v1339_v30, 0.0  ;;  %v21_v51 = vld [vmem:[%s1991_s0 + $0x68] sm:$0xff] }
  0x35   :  { %1102 = vst.msk [vmem:[%s1992_s1 + $0x10] sm:$0xff] %vm1099_vm5, %v895_v8  ;;  %v1371_v13 = vmul.f32 0.25, %v691_v5  ;;  %v595_v14 = vsel %vm570_vm2, %v592_v43, %v594_v7  ;;  %v784_v62 = vadd.f32 %v752_v55, %v1288_v58  ;;  %v206_v15 = vsel %vm104_vm0, 0.0, %v120_v1 }
  0x36   :  { %v899_v18 = vsel %vm898_vm10, %v1299_v10, %v897_v9  ;;  %v692_v19 = vadd.f32 %v595_v14, %v483_v12  ;;  %v122_v20 = vsel %vm104_vm0, %v120_v1, %v121_v44  ;;  %v243_v22 = vmul.f32 0.25, %v206_v15  ;;  %v22_v9 = vld [vmem:[%s1991_s0 + $0x70] sm:$0xff] }
  0x37   :  { %v902_v23 = vsel %vm900_vm11, %v901_v61, %v899_v18  ;;  %v817_v24 = vadd.f32 %v783_v63, %v1371_v13  ;;  %v244_v25 = vmul.f32 0.25, %v122_v20  ;;  %v280_v26 = vmul.f32 0.5, %v206_v15 }
  0x38   :  { %1103 = vst.msk [vmem:[%s1992_s1 + $0x18] sm:$0xff] %vm1099_vm5, %v902_v23  ;;  %v908_v58 = vand.u32 2147483648, %v1339_v30  ;;  %v1388_v27 = vmul.f32 0.25, %v692_v19  ;;  %v281_v28 = vmul.f32 0.5, %v122_v20  ;;  %v596_v29 = vrot.slane %v243_v22, 2 }
  0x39   :  { %v1390_v11 = vadd.f32 1e-12, %v817_v24  ;;  %v387_v17 = vrot.slane %v280_v26, 1  ;;  %v597_v10 = vrot.slane %v244_v25, 2  ;;  %v222_v2 = vsel %vm104_vm0, %v121_v44, 0.0 }
  0x3a   :  { %v818_v31 = vadd.f32 %v784_v62, %v1388_v27  ;;  %v388_v32 = vrot.slane %v281_v28, 1  ;;  %v282_v33 = vmul.f32 0.5, %v222_v2  ;;  %v511_v21 = vmul.f32 0.25, %v222_v2 }
  0x3b   :  { %vm912_vm14 = vcmp.eq.f32.partialorder %v1342_v47, inf  ;;  %vm914_vm15 = vcmp.eq.f32.partialorder %v1342_v47, 0.0  ;;  %1148 = vrsqrt.f32 %v1390_v11  ;;  %v753_v35 = vmul.f32 0.5, %v691_v5 }
  0x3c   :  { %v1145_v37 = vpop.eup %1144  ;;  %v1400_v38 = vadd.f32 1e-12, %v818_v31  ;;  %v389_v39 = vsel %vm361_vm1, %v387_v17, %v388_v32  ;;  %v598_v40 = vsel %vm570_vm2, %v596_v29, %v597_v10  ;;  %v390_v41 = vrot.slane %v282_v33, 1 }
  0x3d   :  { %v1147_v42 = vpop.eup %1146  ;;  %v904_v43 = vmul.f32 %v1145_v37, %v1339_v30  ;;  %v915_v45 = vand.u32 2147483648, %v1342_v47  ;;  %v484_v46 = vadd.f32 %v389_v39, %v243_v22  ;;  %v599_v48 = vrot.slane %v511_v21, 2 }
  0x3e   :  { %v911_v49 = vmul.f32 %v1147_v42, %v1342_v47  ;;  %1150 = vrsqrt.f32 %v1400_v38  ;;  %v754_v50 = vmul.f32 0.5, %v692_v19  ;;  %v52_v52 = vmul.f32 %v20_v36, %v20_v36 }
  0x3f   :  { %v906_v53 = vsel %vm905_vm12, %v1339_v30, %v904_v43  ;;  %v693_v54 = vadd.f32 %v598_v40, %v484_v46  ;;  %v785_v55 = vadd.f32 %v753_v35, %v1320_v16  ;;  %v391_v56 = vsel %vm361_vm1, %v388_v32, %v390_v41 }
  0x40   :  { %v909_v57 = vsel %vm907_vm13, %v908_v58, %v906_v53  ;;  %v913_v59 = vsel %vm912_vm14, %v1342_v47, %v911_v49  ;;  %v485_v60 = vadd.f32 %v391_v56, %v244_v25  ;;  %v600_v61 = vsel %vm570_vm2, %v597_v10, %v599_v48  ;;  %v24_v25 = vld [vmem:[%s1991_s0 + $0x80] sm:$0xff] }
  0x41   :  { %1104 = vst.msk [vmem:[%s1992_s1 + $0x20] sm:$0xff] %vm1099_vm5, %v909_v57  ;;  %v916_v16 = vsel %vm914_vm15, %v915_v45, %v913_v59  ;;  %vm919_vm3 = vcmp.eq.f32.partialorder %v1390_v11, inf  ;;  %v1429_v63 = vmul.f32 0.25, %v693_v54  ;;  %v53_v30 = vmul.f32 %v21_v51, %v21_v51 }
  0x42   :  { %1105 = vst.msk [vmem:[%s1992_s1 + $0x28] sm:$0xff] %vm1099_vm5, %v916_v16  ;;  %vm921_vm4 = vcmp.eq.f32.partialorder %v1390_v11, 0.0  ;;  %v694_v0 = vadd.f32 %v600_v61, %v485_v60  ;;  %v786_v1 = vadd.f32 %v754_v50, %v1325_v34  ;;  %v123_v3 = vrot.slane %v52_v52, 7  ;;  %v23_v34 = vld [vmem:[%s1991_s0 + $0x78] sm:$0xff] }
  0x43   :  { %v922_v4 = vand.u32 2147483648, %v1390_v11  ;;  %vm926_vm6 = vcmp.eq.f32.partialorder %v1400_v38, inf  ;;  %v819_v47 = vadd.f32 %v785_v55, %v1429_v63  ;;  %v124_v5 = vrot.slane %v53_v30, 7 }
  0x44   :  { %vm928_vm7 = vcmp.eq.f32.partialorder %v1400_v38, 0.0  ;;  %v1441_v6 = vmul.f32 0.25, %v694_v0  ;;  %v207_v7 = vsel %vm104_vm0, 0.0, %v123_v3  ;;  %v755_v8 = vmul.f32 0.5, %v693_v54 }
  0x45   :  { %v1450_v12 = vadd.f32 1e-12, %v819_v47  ;;  %v125_v44 = vsel %vm104_vm0, %v123_v3, %v124_v5  ;;  %v245_v14 = vmul.f32 0.25, %v207_v7  ;;  %v283_v62 = vmul.f32 0.5, %v207_v7 }
  0x46   :  { %v820_v15 = vadd.f32 %v786_v1, %v1441_v6  ;;  %v246_v18 = vmul.f32 0.25, %v125_v44  ;;  %v284_v19 = vmul.f32 0.5, %v125_v44  ;;  %v223_v20 = vsel %vm104_vm0, %v124_v5, 0.0 }
  0x47   :  { %1152 = vrsqrt.f32 %v1450_v12  ;;  %v756_v22 = vmul.f32 0.5, %v694_v0  ;;  %v54_v23 = vmul.f32 %v22_v9, %v22_v9  ;;  %v55_v24 = vmul.f32 %v23_v34, %v23_v34 }
  0x48   :  { %v1149_v26 = vpop.eup %1148  ;;  %v1459_v58 = vadd.f32 1e-12, %v820_v15  ;;  %v392_v28 = vrot.slane %v283_v62, 1  ;;  %v393_v29 = vrot.slane %v284_v19, 1  ;;  %v601_v17 = vrot.slane %v245_v14, 2 }
  0x49   :  { %v918_v10 = vmul.f32 %v1149_v26, %v1390_v11  ;;  %v602_v2 = vrot.slane %v246_v18, 2  ;;  %v285_v31 = vmul.f32 0.5, %v223_v20  ;;  %v512_v32 = vmul.f32 0.25, %v223_v20 }
  0x4a   :  { %v929_v33 = vand.u32 2147483648, %v1400_v38  ;;  %1154 = vrsqrt.f32 %v1459_v58  ;;  %v787_v21 = vadd.f32 %v755_v8, %v1371_v13  ;;  %v1465_v35 = vmul.f32 %v24_v25, %v24_v25 }
  0x4b   :  { %v1151_v36 = vpop.eup %1150  ;;  %v920_v37 = vsel %vm919_vm3, %v1390_v11, %v918_v10  ;;  %v394_v39 = vsel %vm361_vm1, %v392_v28, %v393_v29  ;;  %v603_v40 = vsel %vm570_vm2, %v601_v17, %v602_v2  ;;  %v395_v41 = vrot.slane %v285_v31, 1  ;;  %v25_v17 = vld [vmem:[%s1991_s0 + $0x88] sm:$0xff] }
  0x4c   :  { %v923_v42 = vsel %vm921_vm4, %v922_v4, %v920_v37  ;;  %v925_v43 = vmul.f32 %v1151_v36, %v1400_v38  ;;  %vm933_vm8 = vcmp.eq.f32.partialorder %v1450_v12, inf  ;;  %v486_v13 = vadd.f32 %v394_v39, %v245_v14  ;;  %v26_v37 = vld [vmem:[%s1991_s0 + $0x90] sm:$0xff] }
  0x4d   :  { %v604_v45 = vrot.slane %v512_v32, 2  ;;  %1106 = vst.msk [vmem:[%s1992_s1 + $0x30] sm:$0xff] %vm1099_vm5, %v923_v42  ;;  %v396_v46 = vsel %vm361_vm1, %v393_v29, %v395_v41  ;;  %v788_v48 = vadd.f32 %v756_v22, %v1388_v27  ;;  %v126_v49 = vrot.slane %v54_v23, 7 }
  0x4e   :  { %v127_v50 = vrot.slane %v55_v24, 7  ;;  %v927_v11 = vsel %vm926_vm6, %v1400_v38, %v925_v43  ;;  %v695_v51 = vadd.f32 %v603_v40, %v486_v13  ;;  %v487_v52 = vadd.f32 %v396_v46, %v246_v18  ;;  %v27_v13 = vld [vmem:[%s1991_s0 + $0x98] sm:$0xff] }
  0x4f   :  { %v605_v53 = vsel %vm570_vm2, %v602_v2, %v604_v45  ;;  %v930_v54 = vsel %vm928_vm7, %v929_v33, %v927_v11  ;;  %v208_v56 = vsel %vm104_vm0, 0.0, %v126_v49  ;;  %vm935_vm9 = vcmp.eq.f32.partialorder %v1450_v12, 0.0 }
  0x50   :  { %v128_v55 = vsel %vm104_vm0, %v126_v49, %v127_v50  ;;  %v224_v57 = vsel %vm104_vm0, %v127_v50, 0.0  ;;  %1107 = vst.msk [vmem:[%s1992_s1 + $0x38] sm:$0xff] %vm1099_vm5, %v930_v54  ;;  %v1495_v27 = vmul.f32 0.25, %v695_v51  ;;  %v696_v59 = vadd.f32 %v605_v53, %v487_v52 }
  0x51   :  { %v247_v60 = vmul.f32 0.25, %v208_v56  ;;  %v248_v61 = vmul.f32 0.25, %v128_v55  ;;  %v286_v38 = vmul.f32 0.5, %v208_v56  ;;  %v287_v16 = vmul.f32 0.5, %v128_v55 }
  0x52   :  { %v288_v30 = vmul.f32 0.5, %v224_v57  ;;  %v821_v0 = vadd.f32 %v787_v21, %v1495_v27  ;;  %v1499_v1 = vmul.f32 0.25, %v696_v59  ;;  %v936_v47 = vand.u32 2147483648, %v1450_v12 }
  0x53   :  { %v606_v3 = vrot.slane %v247_v60, 2  ;;  %v607_v4 = vrot.slane %v248_v61, 2  ;;  %v397_v5 = vrot.slane %v286_v38, 1  ;;  %v398_v7 = vrot.slane %v287_v16, 1 }
  0x54   :  { %v400_v8 = vrot.slane %v288_v30, 1  ;;  %v1153_v9 = vpop.eup %1152  ;;  %vm940_vm10 = vcmp.eq.f32.partialorder %v1459_v58, inf  ;;  %v1503_v34 = vadd.f32 1e-12, %v821_v0  ;;  %v822_v44 = vadd.f32 %v788_v48, %v1499_v1 }
  0x55   :  { %v513_v14 = vmul.f32 0.25, %v224_v57  ;;  %v932_v62 = vmul.f32 %v1153_v9, %v1450_v12  ;;  %v399_v15 = vsel %vm361_vm1, %v397_v5, %v398_v7  ;;  %v757_v18 = vmul.f32 0.5, %v695_v51  ;;  %v28_v5 = vld [vmem:[%s1991_s0 + $0xa0] sm:$0xff] }
  0x56   :  { %v401_v19 = vsel %vm361_vm1, %v398_v7, %v400_v8  ;;  %v943_v20 = vand.u32 2147483648, %v1459_v58  ;;  %1156 = vrsqrt.f32 %v1503_v34  ;;  %v608_v22 = vsel %vm570_vm2, %v606_v3, %v607_v4 }
  0x57   :  { %v758_v23 = vmul.f32 0.5, %v696_v59  ;;  %v1155_v24 = vpop.eup %1154  ;;  %v934_v25 = vsel %vm933_vm8, %v1450_v12, %v932_v62  ;;  %v1515_v26 = vadd.f32 1e-12, %v822_v44  ;;  %v488_v28 = vadd.f32 %v399_v15, %v247_v60 }
  0x58   :  { %v489_v29 = vadd.f32 %v401_v19, %v248_v61  ;;  %v937_v10 = vsel %vm935_vm9, %v936_v47, %v934_v25  ;;  %v939_v2 = vmul.f32 %v1155_v24, %v1459_v58  ;;  %vm942_vm11 = vcmp.eq.f32.partialorder %v1459_v58, 0.0 }
  0x59   :  { %v609_v31 = vrot.slane %v513_v14, 2  ;;  %1108 = vst.msk [vmem:[%s1992_s1 + $0x40] sm:$0xff] %vm1099_vm5, %v937_v10  ;;  %1158 = vrsqrt.f32 %v1515_v26  ;;  %v789_v32 = vadd.f32 %v757_v18, %v1429_v63  ;;  %v697_v12 = vadd.f32 %v608_v22, %v488_v28 }
  0x5a   :  { %v941_v33 = vsel %vm940_vm10, %v1459_v58, %v939_v2  ;;  %v57_v36 = vmul.f32 %v25_v17, %v25_v17  ;;  %vm947_vm12 = vcmp.eq.f32.partialorder %v1503_v34, inf  ;;  %v790_v41 = vadd.f32 %v758_v23, %v1441_v6 }
  0x5b   :  { %v610_v21 = vsel %vm570_vm2, %v607_v4, %v609_v31  ;;  %v944_v39 = vsel %vm942_vm11, %v943_v20, %v941_v33  ;;  %v129_v63 = vrot.slane %v1465_v35, 7  ;;  %vm949_vm13 = vcmp.eq.f32.partialorder %v1503_v34, 0.0 }
  0x5c   :  { %v698_v40 = vadd.f32 %v610_v21, %v489_v29  ;;  %1109 = vst.msk [vmem:[%s1992_s1 + $0x48] sm:$0xff] %vm1099_vm5, %v944_v39  ;;  %v950_v58 = vand.u32 2147483648, %v1503_v34  ;;  %v1546_v42 = vmul.f32 0.25, %v697_v12  ;;  %v130_v43 = vrot.slane %v57_v36, 7 }
  0x5d   :  { %v209_v6 = vsel %vm104_vm0, 0.0, %v129_v63  ;;  %v759_v35 = vmul.f32 0.5, %v697_v12  ;;  %v58_v46 = vmul.f32 %v26_v37, %v26_v37  ;;  %v59_v54 = vmul.f32 %v27_v13, %v27_v13 }
  0x5e   :  { %v1551_v45 = vmul.f32 0.25, %v698_v40  ;;  %v823_v48 = vadd.f32 %v789_v32, %v1546_v42  ;;  %v131_v49 = vsel %vm104_vm0, %v129_v63, %v130_v43  ;;  %v249_v50 = vmul.f32 0.25, %v209_v6 }
  0x5f   :  { %v289_v11 = vmul.f32 0.5, %v209_v6  ;;  %v250_v52 = vmul.f32 0.25, %v131_v49  ;;  %v290_v53 = vmul.f32 0.5, %v131_v49  ;;  %v225_v59 = vsel %vm104_vm0, %v130_v43, 0.0 }
  0x60   :  { %v824_v51 = vadd.f32 %v790_v41, %v1551_v45  ;;  %v1557_v55 = vadd.f32 1e-12, %v823_v48  ;;  %v611_v57 = vrot.slane %v249_v50, 2  ;;  %v291_v16 = vmul.f32 0.5, %v225_v59 }
  0x61   :  { %v402_v56 = vrot.slane %v289_v11, 1  ;;  %v403_v61 = vrot.slane %v290_v53, 1  ;;  %v612_v38 = vrot.slane %v250_v52, 2  ;;  %vm954_vm14 = vcmp.eq.f32.partialorder %v1515_v26, inf }
  0x62   :  { %v1560_v60 = vadd.f32 1e-12, %v824_v51  ;;  %vm956_vm15 = vcmp.eq.f32.partialorder %v1515_v26, 0.0  ;;  %1160 = vrsqrt.f32 %v1557_v55  ;;  %v132_v30 = vrot.slane %v58_v46, 7 }
  0x63   :  { %v1157_v0 = vpop.eup %1156  ;;  %v957_v3 = vand.u32 2147483648, %v1515_v26  ;;  %v791_v4 = vadd.f32 %v759_v35, %v1495_v27  ;;  %v760_v47 = vmul.f32 0.5, %v698_v40  ;;  %v404_v8 = vsel %vm361_vm1, %v402_v56, %v403_v61  ;;  %v29_v40 = vld [vmem:[%s1991_s0 + $0xa8] sm:$0xff] }
  0x64   :  { %1162 = vrsqrt.f32 %v1560_v60  ;;  %v946_v7 = vmul.f32 %v1157_v0, %v1503_v34  ;;  %v613_v9 = vsel %vm570_vm2, %v611_v57, %v612_v38  ;;  %v405_v44 = vrot.slane %v291_v16, 1 }
  0x65   :  { %v964_v14 = vand.u32 2147483648, %v1557_v55  ;;  %v490_v62 = vadd.f32 %v404_v8, %v249_v50  ;;  %v514_v15 = vmul.f32 0.25, %v225_v59  ;;  %v133_v18 = vrot.slane %v59_v54, 7 }
  0x66   :  { %v1159_v19 = vpop.eup %1158  ;;  %v948_v27 = vsel %vm947_vm12, %v1503_v34, %v946_v7  ;;  %v406_v20 = vsel %vm361_vm1, %v403_v61, %v405_v44  ;;  %v210_v22 = vsel %vm104_vm0, 0.0, %v132_v30  ;;  %v1580_v23 = vmul.f32 %v28_v5, %v28_v5 }
  0x67   :  { %v951_v24 = vsel %vm949_vm13, %v950_v58, %v948_v27  ;;  %v953_v25 = vmul.f32 %v1159_v19, %v1515_v26  ;;  %vm961_vm3 = vcmp.eq.f32.partialorder %v1557_v55, inf  ;;  %v699_v28 = vadd.f32 %v613_v9, %v490_v62 }
  0x68   :  { %v491_v29 = vadd.f32 %v406_v20, %v250_v52  ;;  %1110 = vst.msk [vmem:[%s1992_s1 + $0x50] sm:$0xff] %vm1099_vm5, %v951_v24  ;;  %vm963_vm4 = vcmp.eq.f32.partialorder %v1557_v55, 0.0  ;;  %vm968_vm6 = vcmp.eq.f32.partialorder %v1560_v60, inf  ;;  %v614_v17 = vrot.slane %v514_v15, 2 }
  0x69   :  { %v134_v10 = vsel %vm104_vm0, %v132_v30, %v133_v18  ;;  %v251_v34 = vmul.f32 0.25, %v210_v22  ;;  %v292_v2 = vmul.f32 0.5, %v210_v22  ;;  %v955_v31 = vsel %vm954_vm14, %v1515_v26, %v953_v25 }
  0x6a   :  { %v1596_v32 = vmul.f32 0.25, %v699_v28  ;;  %v252_v33 = vmul.f32 0.25, %v134_v10  ;;  %v293_v12 = vmul.f32 0.5, %v134_v10  ;;  %v958_v21 = vsel %vm956_vm15, %v957_v3, %v955_v31  ;;  %v30_v10 = vld [vmem:[%s1991_s0 + $0xb0] sm:$0xff] }
  0x6b   :  { %v615_v36 = vsel %vm570_vm2, %v612_v38, %v614_v17  ;;  %v407_v37 = vrot.slane %v292_v2, 1  ;;  %v616_v39 = vrot.slane %v251_v34, 2  ;;  %1111 = vst.msk [vmem:[%s1992_s1 + $0x58] sm:$0xff] %vm1099_vm5, %v958_v21  ;;  %vm970_vm7 = vcmp.eq.f32.partialorder %v1560_v60, 0.0 }
  0x6c   :  { %v825_v41 = vadd.f32 %v791_v4, %v1596_v32  ;;  %v700_v63 = vadd.f32 %v615_v36, %v491_v29  ;;  %v408_v58 = vrot.slane %v293_v12, 1  ;;  %v617_v43 = vrot.slane %v252_v33, 2 }
  0x6d   :  { %v792_v26 = vadd.f32 %v760_v47, %v1499_v1  ;;  %v761_v13 = vmul.f32 0.5, %v699_v28  ;;  %v226_v6 = vsel %vm104_vm0, %v133_v18, 0.0  ;;  %v61_v49 = vmul.f32 %v29_v40, %v29_v40 }
  0x6e   :  { %v1612_v35 = vadd.f32 1e-12, %v825_v41  ;;  %v409_v46 = vsel %vm361_vm1, %v407_v37, %v408_v58  ;;  %v618_v48 = vsel %vm570_vm2, %v616_v39, %v617_v43  ;;  %v1616_v50 = vmul.f32 0.25, %v700_v63 }
  0x6f   :  { %v492_v11 = vadd.f32 %v409_v46, %v251_v34  ;;  %v294_v51 = vmul.f32 0.5, %v226_v6  ;;  %v515_v52 = vmul.f32 0.25, %v226_v6  ;;  %v1161_v53 = vpop.eup %1160  ;;  %v971_v54 = vand.u32 2147483648, %v1560_v60  ;;  %v31_v34 = vld [vmem:[%s1991_s0 + $0xb8] sm:$0xff] }
  0x70   :  { %1164 = vrsqrt.f32 %v1612_v35  ;;  %v793_v1 = vadd.f32 %v761_v13, %v1546_v42  ;;  %v135_v56 = vrot.slane %v1580_v23, 7  ;;  %v960_v59 = vmul.f32 %v1161_v53, %v1557_v55 }
  0x71   :  { %v1163_v57 = vpop.eup %1162  ;;  %v826_v61 = vadd.f32 %v792_v26, %v1616_v50  ;;  %v701_v38 = vadd.f32 %v618_v48, %v492_v11  ;;  %v410_v16 = vrot.slane %v294_v51, 1  ;;  %v619_v0 = vrot.slane %v515_v52, 2 }
  0x72   :  { %v967_v30 = vmul.f32 %v1163_v57, %v1560_v60  ;;  %v762_v3 = vmul.f32 0.5, %v700_v63  ;;  %v136_v4 = vrot.slane %v61_v49, 7  ;;  %v962_v47 = vsel %vm961_vm3, %v1557_v55, %v960_v59 }
  0x73   :  { %v1628_v5 = vadd.f32 1e-12, %v826_v61  ;;  %v1630_v42 = vmul.f32 0.25, %v701_v38  ;;  %v411_v7 = vsel %vm361_vm1, %v408_v58, %v410_v16  ;;  %v965_v8 = vsel %vm963_vm4, %v964_v14, %v962_v47 }
  0x74   :  { %v969_v9 = vsel %vm968_vm6, %v1560_v60, %v967_v30  ;;  %v493_v44 = vadd.f32 %v411_v7, %v252_v33  ;;  %v620_v62 = vsel %vm570_vm2, %v617_v43, %v619_v0  ;;  %1112 = vst.msk [vmem:[%s1992_s1 + $0x60] sm:$0xff] %vm1099_vm5, %v965_v8  ;;  %vm975_vm8 = vcmp.eq.f32.partialorder %v1612_v35, inf }
  0x75   :  { %v972_v15 = vsel %vm970_vm7, %v971_v54, %v969_v9  ;;  %1166 = vrsqrt.f32 %v1628_v5  ;;  %v827_v55 = vadd.f32 %v793_v1, %v1630_v42  ;;  %v794_v18 = vadd.f32 %v762_v3, %v1551_v45 }
  0x76   :  { %1113 = vst.msk [vmem:[%s1992_s1 + $0x68] sm:$0xff] %vm1099_vm5, %v972_v15  ;;  %v702_v14 = vadd.f32 %v620_v62, %v493_v44  ;;  %v137_v19 = vsel %vm104_vm0, %v135_v56, %v136_v4  ;;  %v211_v27 = vsel %vm104_vm0, 0.0, %v135_v56  ;;  %v227_v60 = vsel %vm104_vm0, %v136_v4, 0.0 }
  0x77   :  { %vm977_vm9 = vcmp.eq.f32.partialorder %v1612_v35, 0.0  ;;  %v1659_v20 = vadd.f32 1e-12, %v827_v55  ;;  %v253_v22 = vmul.f32 0.25, %v211_v27  ;;  %v254_v23 = vmul.f32 0.25, %v137_v19 }
  0x78   :  { %v1661_v24 = vmul.f32 0.25, %v702_v14  ;;  %v295_v25 = vmul.f32 0.5, %v211_v27  ;;  %v296_v28 = vmul.f32 0.5, %v137_v19  ;;  %v297_v29 = vmul.f32 0.5, %v227_v60 }
  0x79   :  { %v978_v17 = vand.u32 2147483648, %v1612_v35  ;;  %vm982_vm10 = vcmp.eq.f32.partialorder %v1628_v5, inf  ;;  %1168 = vrsqrt.f32 %v1659_v20  ;;  %v763_v45 = vmul.f32 0.5, %v701_v38 }
  0x7a   :  { %v828_v2 = vadd.f32 %v794_v18, %v1661_v24  ;;  %v412_v31 = vrot.slane %v295_v25, 1  ;;  %v413_v33 = vrot.slane %v296_v28, 1  ;;  %v621_v12 = vrot.slane %v253_v22, 2 }
  0x7b   :  { %v622_v21 = vrot.slane %v254_v23, 2  ;;  %v415_v36 = vrot.slane %v297_v29, 1  ;;  %v516_v37 = vmul.f32 0.25, %v227_v60  ;;  %v764_v39 = vmul.f32 0.5, %v702_v14  ;;  %v32_v14 = vld [vmem:[%s1991_s0 + $0xc0] sm:$0xff] }
  0x7c   :  { %v1673_v41 = vadd.f32 1e-12, %v828_v2  ;;  %v414_v63 = vsel %vm361_vm1, %v412_v31, %v413_v33  ;;  %v62_v58 = vmul.f32 %v30_v10, %v30_v10  ;;  %v63_v43 = vmul.f32 %v31_v34, %v31_v34  ;;  %v33_v31 = vld [vmem:[%s1991_s0 + $0xc8] sm:$0xff] }
  0x7d   :  { %v1165_v40 = vpop.eup %1164  ;;  %v494_v13 = vadd.f32 %v414_v63, %v253_v22  ;;  %v623_v6 = vsel %vm570_vm2, %v621_v12, %v622_v21  ;;  %v416_v46 = vsel %vm361_vm1, %v413_v33, %v415_v36  ;;  %vm984_vm11 = vcmp.eq.f32.partialorder %v1628_v5, 0.0 }
  0x7e   :  { %v974_v26 = vmul.f32 %v1165_v40, %v1612_v35  ;;  %v985_v48 = vand.u32 2147483648, %v1628_v5  ;;  %1170 = vrsqrt.f32 %v1673_v41  ;;  %v795_v49 = vadd.f32 %v763_v45, %v1596_v32 }
  0x7f   :  { %v703_v51 = vadd.f32 %v623_v6, %v494_v13  ;;  %v495_v52 = vadd.f32 %v416_v46, %v254_v23  ;;  %v624_v53 = vrot.slane %v516_v37, 2  ;;  %vm989_vm12 = vcmp.eq.f32.partialorder %v1659_v20, inf }
  0x80   :  { %v976_v11 = vsel %vm975_vm8, %v1612_v35, %v974_v26  ;;  %v138_v1 = vrot.slane %v62_v58, 7  ;;  %v139_v56 = vrot.slane %v63_v43, 7  ;;  %vm991_vm13 = vcmp.eq.f32.partialorder %v1659_v20, 0.0 }
  0x81   :  { %v979_v54 = vsel %vm977_vm9, %v978_v17, %v976_v11  ;;  %v1694_v32 = vmul.f32 0.25, %v703_v51  ;;  %v625_v59 = vsel %vm570_vm2, %v622_v21, %v624_v53  ;;  %v796_v61 = vadd.f32 %v764_v39, %v1616_v50 }
  0x82   :  { %v1167_v57 = vpop.eup %1166  ;;  %1114 = vst.msk [vmem:[%s1992_s1 + $0x70] sm:$0xff] %vm1099_vm5, %v979_v54  ;;  %v704_v38 = vadd.f32 %v625_v59, %v495_v52  ;;  %v140_v16 = vsel %vm104_vm0, %v138_v1, %v139_v56  ;;  %v212_v30 = vsel %vm104_vm0, 0.0, %v138_v1  ;;  %v992_v8 = vand.u32 2147483648, %v1659_v20 }
  0x83   :  { %v981_v35 = vmul.f32 %v1167_v57, %v1628_v5  ;;  %v829_v0 = vadd.f32 %v795_v49, %v1694_v32  ;;  %v255_v3 = vmul.f32 0.25, %v212_v30  ;;  %v256_v4 = vmul.f32 0.25, %v140_v16 }
  0x84   :  { %v298_v47 = vmul.f32 0.5, %v212_v30  ;;  %v1706_v9 = vmul.f32 0.25, %v704_v38  ;;  %v299_v50 = vmul.f32 0.5, %v140_v16  ;;  %vm996_vm14 = vcmp.eq.f32.partialorder %v1673_v41, inf }
  0x85   :  { %v983_v7 = vsel %vm982_vm10, %v1628_v5, %v981_v35  ;;  %v1710_v62 = vadd.f32 1e-12, %v829_v0  ;;  %v626_v55 = vrot.slane %v255_v3, 2  ;;  %v627_v60 = vrot.slane %v256_v4, 2  ;;  %v34_v0 = vld [vmem:[%s1991_s0 + $0xd0] sm:$0xff] }
  0x86   :  { %v986_v44 = vsel %vm984_vm11, %v985_v48, %v983_v7  ;;  %v417_v15 = vrot.slane %v298_v47, 1  ;;  %v1169_v18 = vpop.eup %1168  ;;  %v830_v19 = vadd.f32 %v796_v61, %v1706_v9  ;;  %v418_v27 = vrot.slane %v299_v50, 1 }
  0x87   :  { %1115 = vst.msk [vmem:[%s1992_s1 + $0x78] sm:$0xff] %vm1099_vm5, %v986_v44  ;;  %v228_v5 = vsel %vm104_vm0, %v139_v56, 0.0  ;;  %v988_v22 = vmul.f32 %v1169_v18, %v1659_v20  ;;  %1172 = vrsqrt.f32 %v1710_v62  ;;  %v765_v23 = vmul.f32 0.5, %v703_v51 }
  0x88   :  { %v1724_v25 = vadd.f32 1e-12, %v830_v19  ;;  %v419_v28 = vsel %vm361_vm1, %v417_v15, %v418_v27  ;;  %v628_v29 = vsel %vm570_vm2, %v626_v55, %v627_v60  ;;  %v64_v17 = vmul.f32 %v32_v14, %v32_v14 }
  0x89   :  { %v990_v45 = vsel %vm989_vm12, %v1659_v20, %v988_v22  ;;  %v496_v10 = vadd.f32 %v419_v28, %v255_v3  ;;  %v300_v34 = vmul.f32 0.5, %v228_v5  ;;  %v517_v2 = vmul.f32 0.25, %v228_v5 }
  0x8a   :  { %v993_v33 = vsel %vm991_vm13, %v992_v8, %v990_v45  ;;  %vm998_vm15 = vcmp.eq.f32.partialorder %v1673_v41, 0.0  ;;  %v999_v12 = vand.u32 2147483648, %v1673_v41  ;;  %1174 = vrsqrt.f32 %v1724_v25  ;;  %v35_v45 = vld [vmem:[%s1991_s0 + $0xd8] sm:$0xff] }
  0x8b   :  { %v1171_v21 = vpop.eup %1170  ;;  %1116 = vst.msk [vmem:[%s1992_s1 + $0x80] sm:$0xff] %vm1099_vm5, %v993_v33  ;;  %v705_v36 = vadd.f32 %v628_v29, %v496_v10  ;;  %v797_v37 = vadd.f32 %v765_v23, %v1630_v42  ;;  %v420_v39 = vrot.slane %v300_v34, 1  ;;  %v629_v40 = vrot.slane %v517_v2, 2 }
  0x8c   :  { %v995_v20 = vmul.f32 %v1171_v21, %v1673_v41  ;;  %vm1003_vm3 = vcmp.eq.f32.partialorder %v1710_v62, inf  ;;  %v766_v63 = vmul.f32 0.5, %v704_v38  ;;  %v65_v58 = vmul.f32 %v33_v31, %v33_v31 }
  0x8d   :  { %v141_v43 = vrot.slane %v64_v17, 7  ;;  %vm1005_vm4 = vcmp.eq.f32.partialorder %v1710_v62, 0.0  ;;  %v1747_v26 = vmul.f32 0.25, %v705_v36  ;;  %v421_v13 = vsel %vm361_vm1, %v418_v27, %v420_v39 }
  0x8e   :  { %v630_v6 = vsel %vm570_vm2, %v627_v60, %v629_v40  ;;  %v997_v42 = vsel %vm996_vm14, %v1673_v41, %v995_v20  ;;  %v1006_v46 = vand.u32 2147483648, %v1710_v62  ;;  %v497_v48 = vadd.f32 %v421_v13, %v256_v4  ;;  %v36_v13 = vld [vmem:[%s1991_s0 + $0xe0] sm:$0xff] }
  0x8f   :  { %v142_v49 = vrot.slane %v65_v58, 7  ;;  %v1000_v11 = vsel %vm998_vm15, %v999_v12, %v997_v42  ;;  %v831_v51 = vadd.f32 %v797_v37, %v1747_v26  ;;  %v798_v52 = vadd.f32 %v766_v63, %v1661_v24 }
  0x90   :  { %v213_v53 = vsel %vm104_vm0, 0.0, %v141_v43  ;;  %1117 = vst.msk [vmem:[%s1992_s1 + $0x88] sm:$0xff] %vm1099_vm5, %v1000_v11  ;;  %v706_v54 = vadd.f32 %v630_v6, %v497_v48  ;;  %vm1010_vm6 = vcmp.eq.f32.partialorder %v1724_v25, inf  ;;  %v1013_v3 = vand.u32 2147483648, %v1724_v25  ;;  %v37_v6 = vld [vmem:[%s1991_s0 + $0xe8] sm:$0xff] }
  0x91   :  { %v143_v1 = vsel %vm104_vm0, %v141_v43, %v142_v49  ;;  %v257_v56 = vmul.f32 0.25, %v213_v53  ;;  %v301_v57 = vmul.f32 0.5, %v213_v53  ;;  %v1765_v59 = vadd.f32 1e-12, %v831_v51 }
  0x92   :  { %v258_v41 = vmul.f32 0.25, %v143_v1  ;;  %v302_v61 = vmul.f32 0.5, %v143_v1  ;;  %v229_v35 = vsel %vm104_vm0, %v142_v49, 0.0  ;;  %v1768_v38 = vmul.f32 0.25, %v706_v54 }
  0x93   :  { %v422_v24 = vrot.slane %v301_v57, 1  ;;  %v631_v16 = vrot.slane %v257_v56, 2  ;;  %v303_v30 = vmul.f32 0.5, %v229_v35  ;;  %1176 = vrsqrt.f32 %v1765_v59 }
  0x94   :  { %v767_v4 = vmul.f32 0.5, %v705_v36  ;;  %v1173_v47 = vpop.eup %1172  ;;  %v832_v7 = vadd.f32 %v798_v52, %v1768_v38  ;;  %v423_v8 = vrot.slane %v302_v61, 1  ;;  %v632_v50 = vrot.slane %v258_v41, 2 }
  0x95   :  { %v425_v44 = vrot.slane %v303_v30, 1  ;;  %v1002_v15 = vmul.f32 %v1173_v47, %v1710_v62  ;;  %v518_v55 = vmul.f32 0.25, %v229_v35  ;;  %v768_v14 = vmul.f32 0.5, %v706_v54 }
  0x96   :  { %v66_v18 = vmul.f32 %v34_v0, %v34_v0  ;;  %v1778_v19 = vadd.f32 1e-12, %v832_v7  ;;  %v424_v27 = vsel %vm361_vm1, %v422_v24, %v423_v8  ;;  %v633_v60 = vsel %vm570_vm2, %v631_v16, %v632_v50 }
  0x97   :  { %v426_v5 = vsel %vm361_vm1, %v423_v8, %v425_v44  ;;  %v1175_v22 = vpop.eup %1174  ;;  %v1004_v23 = vsel %vm1003_vm3, %v1710_v62, %v1002_v15  ;;  %v498_v28 = vadd.f32 %v424_v27, %v257_v56  ;;  %v634_v17 = vrot.slane %v518_v55, 2 }
  0x98   :  { %v499_v29 = vadd.f32 %v426_v5, %v258_v41  ;;  %v1007_v10 = vsel %vm1005_vm4, %v1006_v46, %v1004_v23  ;;  %v1009_v34 = vmul.f32 %v1175_v22, %v1724_v25  ;;  %vm1012_vm7 = vcmp.eq.f32.partialorder %v1724_v25, 0.0 }
  0x99   :  { %1178 = vrsqrt.f32 %v1778_v19  ;;  %1118 = vst.msk [vmem:[%s1992_s1 + $0x90] sm:$0xff] %vm1099_vm5, %v1007_v10  ;;  %v707_v2 = vadd.f32 %v633_v60, %v498_v28  ;;  %v799_v31 = vadd.f32 %v767_v4, %v1694_v32  ;;  %v635_v33 = vsel %vm570_vm2, %v632_v50, %v634_v17 }
  0x9a   :  { %v1011_v62 = vsel %vm1010_vm6, %v1724_v25, %v1009_v34  ;;  %v708_v12 = vadd.f32 %v635_v33, %v499_v29  ;;  %v800_v21 = vadd.f32 %v768_v14, %v1706_v9  ;;  %v67_v36 = vmul.f32 %v35_v45, %v35_v45 }
  0x9b   :  { %v1014_v37 = vsel %vm1012_vm7, %v1013_v3, %v1011_v62  ;;  %vm1017_vm8 = vcmp.eq.f32.partialorder %v1765_v59, inf  ;;  %v1805_v39 = vmul.f32 0.25, %v707_v2  ;;  %v144_v40 = vrot.slane %v66_v18, 7 }
  0x9c   :  { %1119 = vst.msk [vmem:[%s1992_s1 + $0x98] sm:$0xff] %vm1099_vm5, %v1014_v37  ;;  %vm1019_vm9 = vcmp.eq.f32.partialorder %v1765_v59, 0.0  ;;  %v1020_v32 = vand.u32 2147483648, %v1765_v59  ;;  %v1813_v25 = vmul.f32 0.25, %v708_v12  ;;  %v145_v20 = vrot.slane %v67_v36, 7 }
  0x9d   :  { %v833_v9 = vadd.f32 %v799_v31, %v1805_v39  ;;  %v214_v63 = vsel %vm104_vm0, 0.0, %v144_v40  ;;  %v769_v58 = vmul.f32 0.5, %v707_v2  ;;  %v770_v43 = vmul.f32 0.5, %v708_v12 }
  0x9e   :  { %v834_v42 = vadd.f32 %v800_v21, %v1813_v25  ;;  %v146_v46 = vsel %vm104_vm0, %v144_v40, %v145_v20  ;;  %v259_v48 = vmul.f32 0.25, %v214_v63  ;;  %v304_v49 = vmul.f32 0.5, %v214_v63 }
  0x9f   :  { %v1825_v11 = vadd.f32 1e-12, %v833_v9  ;;  %v260_v51 = vmul.f32 0.25, %v146_v46  ;;  %v305_v52 = vmul.f32 0.5, %v146_v46  ;;  %v230_v53 = vsel %vm104_vm0, %v145_v20, 0.0 }
  0xa0   :  { %v1177_v54 = vpop.eup %1176  ;;  %v1828_v1 = vadd.f32 1e-12, %v834_v42  ;;  %v306_v56 = vmul.f32 0.5, %v230_v53  ;;  %v68_v57 = vmul.f32 %v36_v13, %v36_v13  ;;  %v69_v41 = vmul.f32 %v37_v6, %v37_v6  ;;  %v38_v13 = vld [vmem:[%s1991_s0 + $0xf0] sm:$0xff] }
  0xa1   :  { %v1016_v61 = vmul.f32 %v1177_v54, %v1765_v59  ;;  %1180 = vrsqrt.f32 %v1825_v11  ;;  %v427_v35 = vrot.slane %v304_v49, 1  ;;  %v636_v24 = vrot.slane %v259_v48, 2 }
  0xa2   :  { %vm1024_vm10 = vcmp.eq.f32.partialorder %v1778_v19, inf  ;;  %vm1026_vm11 = vcmp.eq.f32.partialorder %v1778_v19, 0.0  ;;  %v1027_v16 = vand.u32 2147483648, %v1778_v19  ;;  %1182 = vrsqrt.f32 %v1828_v1 }
  0xa3   :  { %v1018_v30 = vsel %vm1017_vm8, %v1765_v59, %v1016_v61  ;;  %v428_v0 = vrot.slane %v305_v52, 1  ;;  %v637_v3 = vrot.slane %v260_v51, 2  ;;  %v801_v4 = vadd.f32 %v769_v58, %v1747_v26 }
  0xa4   :  { %v1021_v47 = vsel %vm1019_vm9, %v1020_v32, %v1018_v30  ;;  %v430_v7 = vrot.slane %v306_v56, 1  ;;  %v519_v8 = vmul.f32 0.25, %v230_v53  ;;  %v802_v50 = vadd.f32 %v770_v43, %v1768_v38 }
  0xa5   :  { %1120 = vst.msk [vmem:[%s1992_s1 + $0xa0] sm:$0xff] %vm1099_vm5, %v1021_v47  ;;  %v429_v15 = vsel %vm361_vm1, %v427_v35, %v428_v0  ;;  %v638_v55 = vsel %vm570_vm2, %v636_v24, %v637_v3  ;;  %v147_v14 = vrot.slane %v68_v57, 7  ;;  %v148_v18 = vrot.slane %v69_v41, 7 }
  0xa6   :  { %v1179_v44 = vpop.eup %1178  ;;  %vm1031_vm12 = vcmp.eq.f32.partialorder %v1825_v11, inf  ;;  %v500_v59 = vadd.f32 %v429_v15, %v259_v48  ;;  %v431_v27 = vsel %vm361_vm1, %v428_v0, %v430_v7  ;;  %v639_v38 = vrot.slane %v519_v8, 2 }
  0xa7   :  { %v1023_v26 = vmul.f32 %v1179_v44, %v1778_v19  ;;  %vm1033_vm13 = vcmp.eq.f32.partialorder %v1825_v11, 0.0  ;;  %v501_v60 = vadd.f32 %v431_v27, %v260_v51  ;;  %v149_v5 = vsel %vm104_vm0, %v147_v14, %v148_v18 }
  0xa8   :  { %v215_v22 = vsel %vm104_vm0, 0.0, %v147_v14  ;;  %v231_v23 = vsel %vm104_vm0, %v148_v18, 0.0  ;;  %v709_v29 = vadd.f32 %v638_v55, %v500_v59  ;;  %v640_v17 = vsel %vm570_vm2, %v637_v3, %v639_v38 }
  0xa9   :  { %v1025_v28 = vsel %vm1024_vm10, %v1778_v19, %v1023_v26  ;;  %v261_v45 = vmul.f32 0.25, %v215_v22  ;;  %v710_v34 = vadd.f32 %v640_v17, %v501_v60  ;;  %v262_v2 = vmul.f32 0.25, %v149_v5 }
  0xaa   :  { %v1028_v10 = vsel %vm1026_vm11, %v1027_v16, %v1025_v28  ;;  %v307_v31 = vmul.f32 0.5, %v215_v22  ;;  %v1034_v33 = vand.u32 2147483648, %v1825_v11  ;;  %v1867_v62 = vmul.f32 0.25, %v709_v29  ;;  %v39_v16 = vld [vmem:[%s1991_s0 + $0xf8] sm:$0xff] }
  0xab   :  { %1121 = vst.msk [vmem:[%s1992_s1 + $0xa8] sm:$0xff] %vm1099_vm5, %v1028_v10  ;;  %v308_v12 = vmul.f32 0.5, %v149_v5  ;;  %v641_v21 = vrot.slane %v261_v45, 2  ;;  %v1869_v36 = vmul.f32 0.25, %v710_v34  ;;  %v642_v40 = vrot.slane %v262_v2, 2 }
  0xac   :  { %v432_v37 = vrot.slane %v307_v31, 1  ;;  %v309_v19 = vmul.f32 0.5, %v231_v23  ;;  %vm1038_vm14 = vcmp.eq.f32.partialorder %v1828_v1, inf  ;;  %v835_v32 = vadd.f32 %v801_v4, %v1867_v62 }
  0xad   :  { %v433_v20 = vrot.slane %v308_v12, 1  ;;  %v520_v9 = vmul.f32 0.25, %v231_v23  ;;  %vm1040_vm15 = vcmp.eq.f32.partialorder %v1828_v1, 0.0  ;;  %v1041_v63 = vand.u32 2147483648, %v1828_v1 }
  0xae   :  { %v836_v58 = vadd.f32 %v802_v50, %v1869_v36  ;;  %v435_v43 = vrot.slane %v309_v19, 1  ;;  %v1181_v6 = vpop.eup %1180  ;;  %v1879_v42 = vadd.f32 1e-12, %v835_v32  ;;  %v643_v48 = vsel %vm570_vm2, %v641_v21, %v642_v40 }
  0xaf   :  { %v434_v46 = vsel %vm361_vm1, %v432_v37, %v433_v20  ;;  %v771_v49 = vmul.f32 0.5, %v709_v29  ;;  %v1183_v51 = vpop.eup %1182  ;;  %v1030_v52 = vmul.f32 %v1181_v6, %v1825_v11  ;;  %v644_v56 = vrot.slane %v520_v9, 2 }
  0xb0   :  { %v1884_v53 = vadd.f32 1e-12, %v836_v58  ;;  %v502_v54 = vadd.f32 %v434_v46, %v261_v45  ;;  %v1037_v57 = vmul.f32 %v1183_v51, %v1828_v1  ;;  %1184 = vrsqrt.f32 %v1879_v42 }
  0xb1   :  { %v436_v41 = vsel %vm361_vm1, %v433_v20, %v435_v43  ;;  %v70_v61 = vmul.f32 %v38_v13, %v38_v13  ;;  %v1032_v35 = vsel %vm1031_vm12, %v1825_v11, %v1030_v52  ;;  %v772_v24 = vmul.f32 0.5, %v710_v34 }
  0xb2   :  { %1186 = vrsqrt.f32 %v1884_v53  ;;  %v1035_v30 = vsel %vm1033_vm13, %v1034_v33, %v1032_v35  ;;  %v1039_v0 = vsel %vm1038_vm14, %v1828_v1, %v1037_v57  ;;  %v803_v3 = vadd.f32 %v771_v49, %v1805_v39 }
  0xb3   :  { %1122 = vst.msk [vmem:[%s1992_s1 + $0xb0] sm:$0xff] %vm1099_vm5, %v1035_v30  ;;  %v1042_v4 = vsel %vm1040_vm15, %v1041_v63, %v1039_v0  ;;  %v711_v47 = vadd.f32 %v643_v48, %v502_v54  ;;  %v503_v7 = vadd.f32 %v436_v41, %v262_v2  ;;  %v645_v8 = vsel %vm570_vm2, %v642_v40, %v644_v56 }
  0xb4   :  { %1123 = vst.msk [vmem:[%s1992_s1 + $0xb8] sm:$0xff] %vm1099_vm5, %v1042_v4  ;;  %v71_v11 = vmul.f32 %v39_v16, %v39_v16  ;;  %v150_v50 = vrot.slane %v70_v61, 7  ;;  %v804_v15 = vadd.f32 %v772_v24, %v1813_v25  ;;  %vm1045_vm3 = vcmp.eq.f32.partialorder %v1879_v42, inf }
  0xb5   :  { %v743_v39 = vmul.f32 0.25, %v711_v47  ;;  %v712_v44 = vadd.f32 %v645_v8, %v503_v7  ;;  %vm1047_vm4 = vcmp.eq.f32.partialorder %v1879_v42, 0.0  ;;  %v1048_v33 = vand.u32 2147483648, %v1879_v42 }
  0xb6   :  { %v151_v55 = vrot.slane %v71_v11, 7  ;;  %v216_v14 = vsel %vm104_vm0, 0.0, %v150_v50  ;;  %vm1054_vm6 = vcmp.eq.f32.partialorder %v1884_v53, 0.0  ;;  %v1055_v40 = vand.u32 2147483648, %v1884_v53 }
  0xb7   :  { %v837_v1 = vadd.f32 %v803_v3, %v743_v39  ;;  %v744_v18 = vmul.f32 0.25, %v712_v44  ;;  %v263_v26 = vmul.f32 0.25, %v216_v14  ;;  %v310_v59 = vmul.f32 0.5, %v216_v14 }
  0xb8   :  { %v152_v27 = vsel %vm104_vm0, %v150_v50, %v151_v55  ;;  %v232_v38 = vsel %vm104_vm0, %v151_v55, 0.0  ;;  %vm1052_vm0 = vcmp.eq.f32.partialorder %v1884_v53, inf  ;;  %v773_v19 = vmul.f32 0.5, %v711_v47 }
  0xb9   :  { %v1917_v60 = vadd.f32 1e-12, %v837_v1  ;;  %v838_v5 = vadd.f32 %v804_v15, %v744_v18  ;;  %v264_v22 = vmul.f32 0.25, %v152_v27  ;;  %v311_v23 = vmul.f32 0.5, %v152_v27 }
  0xba   :  { %v312_v28 = vmul.f32 0.5, %v232_v38  ;;  %v521_v25 = vmul.f32 0.25, %v232_v38  ;;  %v437_v29 = vrot.slane %v310_v59, 1  ;;  %v646_v17 = vrot.slane %v263_v26, 2 }
  0xbb   :  { %1188 = vrsqrt.f32 %v1917_v60  ;;  %v1922_v45 = vadd.f32 1e-12, %v838_v5  ;;  %v438_v10 = vrot.slane %v311_v23, 1  ;;  %v647_v34 = vrot.slane %v264_v22, 2 }
  0xbc   :  { %v440_v2 = vrot.slane %v312_v28, 1  ;;  %v649_v12 = vrot.slane %v521_v25, 2  ;;  %v774_v63 = vmul.f32 0.5, %v712_v44  ;;  %v805_v54 = vadd.f32 %v773_v19, %v1867_v62 }
  0xbd   :  { %v1185_v31 = vpop.eup %1184  ;;  %1190 = vrsqrt.f32 %v1922_v45  ;;  %v439_v20 = vsel %vm361_vm1, %v437_v29, %v438_v10  ;;  %v648_v9 = vsel %vm570_vm2, %v646_v17, %v647_v34  ;;  %v1062_v62 = vand.u32 2147483648, %v1917_v60 }
  0xbe   :  { %v1044_v37 = vmul.f32 %v1185_v31, %v1879_v42  ;;  %v504_v43 = vadd.f32 %v439_v20, %v263_v26  ;;  %v441_v13 = vsel %vm361_vm1, %v438_v10, %v440_v2  ;;  %v650_v6 = vsel %vm570_vm2, %v647_v34, %v649_v12 }
  0xbf   :  { %v1187_v21 = vpop.eup %1186  ;;  %v505_v49 = vadd.f32 %v441_v13, %v264_v22  ;;  %v806_v56 = vadd.f32 %v774_v63, %v1869_v36  ;;  %vm1059_vm1 = vcmp.eq.f32.partialorder %v1917_v60, inf  ;;  %vm1061_vm2 = vcmp.eq.f32.partialorder %v1917_v60, 0.0 }
  0xc0   :  { %v1051_v32 = vmul.f32 %v1187_v21, %v1884_v53  ;;  %v1046_v58 = vsel %vm1045_vm3, %v1879_v42, %v1044_v37  ;;  %v713_v52 = vadd.f32 %v648_v9, %v504_v43  ;;  %vm1066_vm7 = vcmp.eq.f32.partialorder %v1922_v45, inf }
  0xc1   :  { %v1049_v46 = vsel %vm1047_vm4, %v1048_v33, %v1046_v58  ;;  %v714_v42 = vadd.f32 %v650_v6, %v505_v49  ;;  %v1069_v50 = vand.u32 2147483648, %v1922_v45  ;;  %vm1068_vm8 = vcmp.eq.f32.partialorder %v1922_v45, 0.0 }
  0xc2   :  { %v1053_v48 = vsel %vm1052_vm0, %v1884_v53, %v1051_v32  ;;  %1124 = vst.msk [vmem:[%s1992_s1 + $0xc0] sm:$0xff] %vm1099_vm5, %v1049_v46  ;;  %v809_v57 = vmul.f32 0.25, %v713_v52  ;;  %v775_v41 = vmul.f32 0.5, %v713_v52 }
  0xc3   :  { %v1056_v51 = vsel %vm1054_vm6, %v1055_v40, %v1053_v48  ;;  %v810_v61 = vmul.f32 0.25, %v714_v42  ;;  %v776_v35 = vmul.f32 0.5, %v714_v42 }
  0xc4   :  { %1125 = vst.msk [vmem:[%s1992_s1 + $0xc8] sm:$0xff] %vm1099_vm5, %v1056_v51  ;;  %v839_v24 = vadd.f32 %v809_v57, %v805_v54  ;;  %v807_v16 = vadd.f32 %v775_v41, %v743_v39 }
  0xc5   :  { %v840_v30 = vadd.f32 %v810_v61, %v806_v56  ;;  %v808_v53 = vadd.f32 %v776_v35, %v744_v18 }
  0xc6   :  { %v871_v3 = vadd.f32 1e-12, %v839_v24  ;;  %v873_v4 = vadd.f32 1e-12, %v807_v16 }
  0xc7   :  { %v872_v36 = vadd.f32 1e-12, %v840_v30  ;;  %v874_v7 = vadd.f32 1e-12, %v808_v53 }
  0xc8   :  { %v1189_v0 = vpop.eup %1188  ;;  %1192 = vrsqrt.f32 %v871_v3  ;;  %vm1073_vm9 = vcmp.eq.f32.partialorder %v871_v3, inf  ;;  %vm1075_vm10 = vcmp.eq.f32.partialorder %v871_v3, 0.0  ;;  %v1076_v1 = vand.u32 2147483648, %v871_v3 }
  0xc9   :  { %v1058_v47 = vmul.f32 %v1189_v0, %v1917_v60  ;;  %1194 = vrsqrt.f32 %v872_v36  ;;  %vm1080_vm11 = vcmp.eq.f32.partialorder %v872_v36, inf  ;;  %vm1082_vm12 = vcmp.eq.f32.partialorder %v872_v36, 0.0 }
  0xca   :  { %v1191_v8 = vpop.eup %1190  ;;  %1196 = vrsqrt.f32 %v873_v4  ;;  %v1083_v59 = vand.u32 2147483648, %v872_v36  ;;  %vm1087_vm13 = vcmp.eq.f32.partialorder %v873_v4, inf  ;;  %vm1089_vm14 = vcmp.eq.f32.partialorder %v873_v4, 0.0 }
  0xcb   :  { %v1060_v11 = vsel %vm1059_vm1, %v1917_v60, %v1058_v47  ;;  %v1065_v44 = vmul.f32 %v1191_v8, %v1922_v45  ;;  %1198 = vrsqrt.f32 %v874_v7  ;;  %v1090_v60 = vand.u32 2147483648, %v873_v4 }
  0xcc   :  { %v1063_v39 = vsel %vm1061_vm2, %v1062_v62, %v1060_v11  ;;  %vm1094_vm15 = vcmp.eq.f32.partialorder %v874_v7, inf  ;;  %v1097_v28 = vand.u32 2147483648, %v874_v7  ;;  %vm1096_vm3 = vcmp.eq.f32.partialorder %v874_v7, 0.0 }
  0xcd   :  { %1126 = vst.msk [vmem:[%s1992_s1 + $0xd0] sm:$0xff] %vm1099_vm5, %v1063_v39  ;;  %v1067_v15 = vsel %vm1066_vm7, %v1922_v45, %v1065_v44 }
  0xce   :  { %v1070_v55 = vsel %vm1068_vm8, %v1069_v50, %v1067_v15 }
  0xcf   :  { %1127 = vst.msk [vmem:[%s1992_s1 + $0xd8] sm:$0xff] %vm1099_vm5, %v1070_v55 }
  0xd5   :  { %v1193_v14 = vpop.eup %1192 }
  0xd6   :  { %v1195_v18 = vpop.eup %1194  ;;  %v1072_v26 = vmul.f32 %v1193_v14, %v871_v3 }
  0xd7   :  { %v1197_v27 = vpop.eup %1196  ;;  %v1079_v38 = vmul.f32 %v1195_v18, %v872_v36 }
  0xd8   :  { %v1199_v5 = vpop.eup %1198  ;;  %v1074_v22 = vsel %vm1073_vm9, %v871_v3, %v1072_v26  ;;  %v1086_v23 = vmul.f32 %v1197_v27, %v873_v4 }
  0xd9   :  { %v1077_v25 = vsel %vm1075_vm10, %v1076_v1, %v1074_v22  ;;  %v1081_v29 = vsel %vm1080_vm11, %v872_v36, %v1079_v38  ;;  %v1093_v17 = vmul.f32 %v1199_v5, %v874_v7 }
  0xda   :  { %1128 = vst.msk [vmem:[%s1992_s1 + $0xe0] sm:$0xff] %vm1099_vm5, %v1077_v25  ;;  %v1084_v45 = vsel %vm1082_vm12, %v1083_v59, %v1081_v29  ;;  %v1088_v10 = vsel %vm1087_vm13, %v873_v4, %v1086_v23 }
  0xdb   :  { %1129 = vst.msk [vmem:[%s1992_s1 + $0xe8] sm:$0xff] %vm1099_vm5, %v1084_v45  ;;  %v1091_v34 = vsel %vm1089_vm14, %v1090_v60, %v1088_v10  ;;  %v1095_v2 = vsel %vm1094_vm15, %v874_v7, %v1093_v17 }
  0xdc   :  { %1130 = vst.msk [vmem:[%s1992_s1 + $0xf0] sm:$0xff] %vm1099_vm5, %v1091_v34  ;;  %v1098_v31 = vsel %vm1096_vm3, %v1097_v28, %v1095_v2 }
  0xdd   :  { %1131 = vst.msk [vmem:[%s1992_s1 + $0xf8] sm:$0xff] %vm1099_vm5, %v1098_v31 }

</bundles_post_ra>
